<compile_context>
chip_gen: v6e
topology: v6e:2x2x1
jax: 0.10.0
libtpu: 0.0.40
codegen_flags: <defaults>
</compile_context>

<pallas_src>
import jax
import jax.numpy as jnp
from jax.experimental import pallas as pl
from jax.experimental.pallas import tpu as pltpu


def _cell_kernel(dp_ref, x0_ref, x1_ref, w0t_ref, w1t_ref, o_ref):
    # dp_ref  : (1,) scalar droppath keep factor in SMEM
    # x0_ref  : (1, C, hw_tile) NCHW tile of s0 (HW on the lane axis)
    # x1_ref  : (1, C, hw_tile) NCHW tile of s1
    # w0t_ref : (C, C) transposed 1x1-conv weight w0.T
    # w1t_ref : (C, C) transposed 1x1-conv weight w1.T
    # o_ref   : (1, C, hw_tile) output tile
    acc = jnp.dot(w0t_ref[...], x0_ref[0],
                  preferred_element_type=jnp.float32)          # (C, hw)
    acc = acc + jnp.dot(w1t_ref[...], x1_ref[0],
                        preferred_element_type=jnp.float32)    # (C, hw)
    acc = jnp.maximum(acc, 0.0)                                # ReLU
    acc = acc * dp_ref[0]                                      # droppath scale
    o_ref[0] = acc.astype(o_ref.dtype)


def _cell_pallas(x0, x1, w0t, w1t, droppath, *, hw_tile=None):
    # x0, x1: (N, C, HW) (NCHW with spatial flattened); w0t, w1t: (C, C)
    N, C, HW = x0.shape
    if hw_tile is None:
        # Lane-dense tiles when possible; otherwise one full-HW block per
        # step (full-extent blocks always satisfy the (8,128) rule).
        hw_tile = min(HW, 2048) if HW % 128 == 0 else HW
    dp = jnp.asarray(droppath, dtype=jnp.float32).reshape((1,))
    grid = (N, pl.cdiv(HW, hw_tile))
    return pl.pallas_call(
        _cell_kernel,
        out_shape=jax.ShapeDtypeStruct((N, C, HW), x0.dtype),
        grid=grid,
        in_specs=[
            pl.BlockSpec(memory_space=pltpu.MemorySpace.SMEM),          # droppath
            pl.BlockSpec((1, C, hw_tile), lambda n, j: (n, 0, j)),      # x0 tile
            pl.BlockSpec((1, C, hw_tile), lambda n, j: (n, 0, j)),      # x1 tile
            pl.BlockSpec((C, C), lambda n, j: (0, 0)),                  # w0.T
            pl.BlockSpec((C, C), lambda n, j: (0, 0)),                  # w1.T
        ],
        out_specs=pl.BlockSpec((1, C, hw_tile), lambda n, j: (n, 0, j)),
        compiler_params=pltpu.CompilerParams(
            dimension_semantics=("parallel", "parallel")),
    )(dp, x0, x1, w0t, w1t)


class DropChannelPallas:
    """JAX/Pallas equivalent of DropChannel(p, mod): stores p (unused by
    forward, matching the PyTorch module) and delegates to `mod`."""

    def __init__(self, p, mod):
        self.p = p
        self.mod = mod

    def __call__(self, s0, s1, droppath):
        return self.mod(s0, s1, droppath)


def make_cell_mod(w0, w1, hw_tile=None):
    """The wrapped `mod`: two 1x1 convs on NCHW inputs, sum, ReLU, droppath
    scale.  All channel-mixing compute runs inside the Pallas kernel in
    native NCHW layout (no transposes in the wrapper)."""
    # One-time weight prep (tiny, outside the hot path):
    # out[c_out, hw] = sum_c w0[c, c_out]*x0[c, hw] + w1[c, c_out]*x1[c, hw]
    w0t = jnp.asarray(w0).T  # (C, C)
    w1t = jnp.asarray(w1).T  # (C, C)

    def mod(s0, s1, droppath):
        N, C, H, W = s0.shape
        x0 = s0.reshape(N, C, H * W)      # zero-copy collapse of spatial dims
        x1 = s1.reshape(N, C, H * W)
        out = _cell_pallas(x0, x1, w0t, w1t, droppath, hw_tile=hw_tile)
        return out.reshape(N, C, H, W)    # zero-copy

    return mod


if __name__ == "__main__":
    key = jax.random.PRNGKey(0)
    k0, k1, k2, k3 = jax.random.split(key, 4)

    N, C, H, W = 2, 32, 16, 16            # HW = 256 (multiple of 128)
    s0 = jax.random.normal(k0, (N, C, H, W), dtype=jnp.float32)
    s1 = jax.random.normal(k1, (N, C, H, W), dtype=jnp.float32)
    # deterministic 1x1-conv weights for the wrapped mod
    w0 = jax.random.normal(k2, (C, C), dtype=jnp.float32) / jnp.sqrt(C)
    w1 = jax.random.normal(k3, (C, C), dtype=jnp.float32) / jnp.sqrt(C)
    droppath = 0.8

    module = DropChannelPallas(p=0.5, mod=make_cell_mod(w0, w1))
    out = jax.block_until_ready(module(s0, s1, droppath))

    # pure-JAX reference of the same 1x1-conv cell, computed directly in NCHW
    ref = (jnp.einsum("ci,nchw->nihw", w0, s0)
           + jnp.einsum("ci,nchw->nihw", w1, s1))
    ref = jnp.maximum(ref, 0.0) * droppath

    assert out.shape == (N, C, H, W)
    max_err = float(jnp.max(jnp.abs(out - ref)))
    # loose tolerance: MXU default-precision f32 matmul vs XLA einsum
    assert jnp.allclose(out, ref, atol=2e-2, rtol=2e-2), f"max abs err {max_err}"

    print("KERNEL_OK")
</pallas_src>

<mosaic_0001>
module attributes {stable_mosaic.version = 11 : i64} {
  func.func @_cell_kernel(%arg0: i32, %arg1: i32, %arg2: memref<1xf32, #tpu.memory_space<smem>>, %arg3: memref<1x32x256xf32, #tpu.memory_space<vmem>>, %arg4: memref<1x32x256xf32, #tpu.memory_space<vmem>>, %arg5: memref<32x32xf32, #tpu.memory_space<vmem>>, %arg6: memref<32x32xf32, #tpu.memory_space<vmem>>, %arg7: memref<1x32x256xf32, #tpu.memory_space<vmem>>) attributes {dimension_semantics = [#tpu.dimension_semantics<parallel>, #tpu.dimension_semantics<parallel>], iteration_bounds = array<i64: 2, 1>, scalar_prefetch = 0 : i64, scratch_operands = 0 : i64, tpu.core_type = #tpu.core_type<tc>, window_params = [{transform_indices = @transform_0, window_bounds = array<i64: 1>}, {transform_indices = @transform_1, window_bounds = array<i64: 1, 32, 256>}, {transform_indices = @transform_2, window_bounds = array<i64: 1, 32, 256>}, {pipeline_mode = #tpu.pipeline_mode<synchronous>, transform_indices = @transform_3, window_bounds = array<i64: 32, 32>}, {pipeline_mode = #tpu.pipeline_mode<synchronous>, transform_indices = @transform_4, window_bounds = array<i64: 32, 32>}, {transform_indices = @transform_5, window_bounds = array<i64: 1, 32, 256>}]} {
    %c0 = arith.constant 0 : index
    %c0_0 = arith.constant 0 : index
    %0 = vector.load %arg5[%c0, %c0_0] : memref<32x32xf32, #tpu.memory_space<vmem>>, vector<32x32xf32>
    %c0_1 = arith.constant 0 : index
    %c0_2 = arith.constant 0 : index
    %c0_3 = arith.constant 0 : index
    %1 = vector.load %arg3[%c0_1, %c0_2, %c0_3] : memref<1x32x256xf32, #tpu.memory_space<vmem>>, vector<1x32x256xf32>
    %2 = vector.shape_cast %1 : vector<1x32x256xf32> to vector<32x256xf32>
    %cst = arith.constant dense<0.000000e+00> : vector<32x256xf32>
    %3 = tpu.matmul %0, %2, %cst {dimension_numbers = #tpu.dot_dimension_numbers<[1], [0], [0], [1], [0, 0, 1, 1], [], []>} : vector<32x32xf32>, vector<32x256xf32>, vector<32x256xf32> -> vector<32x256xf32>
    %c0_4 = arith.constant 0 : index
    %c0_5 = arith.constant 0 : index
    %4 = vector.load %arg6[%c0_4, %c0_5] : memref<32x32xf32, #tpu.memory_space<vmem>>, vector<32x32xf32>
    %c0_6 = arith.constant 0 : index
    %c0_7 = arith.constant 0 : index
    %c0_8 = arith.constant 0 : index
    %5 = vector.load %arg4[%c0_6, %c0_7, %c0_8] : memref<1x32x256xf32, #tpu.memory_space<vmem>>, vector<1x32x256xf32>
    %6 = vector.shape_cast %5 : vector<1x32x256xf32> to vector<32x256xf32>
    %cst_9 = arith.constant dense<0.000000e+00> : vector<32x256xf32>
    %7 = tpu.matmul %4, %6, %cst_9 {dimension_numbers = #tpu.dot_dimension_numbers<[1], [0], [0], [1], [0, 0, 1, 1], [], []>} : vector<32x32xf32>, vector<32x256xf32>, vector<32x256xf32> -> vector<32x256xf32>
    %8 = arith.addf %3, %7 : vector<32x256xf32>
    %cst_10 = arith.constant 0.000000e+00 : f32
    %9 = vector.broadcast %cst_10 : f32 to vector<32x256xf32>
    %10 = arith.maximumf %8, %9 : vector<32x256xf32>
    %c0_11 = arith.constant 0 : index
    %11 = memref.load %arg2[%c0_11] : memref<1xf32, #tpu.memory_space<smem>>
    %12 = vector.broadcast %11 : f32 to vector<32x256xf32>
    %13 = arith.mulf %10, %12 : vector<32x256xf32>
    %c0_12 = arith.constant 0 : index
    %c0_13 = arith.constant 0 : index
    %c0_14 = arith.constant 0 : index
    %14 = vector.load %arg7[%c0_12, %c0_13, %c0_14] : memref<1x32x256xf32, #tpu.memory_space<vmem>>, vector<1x32x256xf32>
    %15 = vector.shape_cast %14 : vector<1x32x256xf32> to vector<32x256xf32>
    %16 = vector.shape_cast %13 : vector<32x256xf32> to vector<1x32x256xf32>
    tpu.vector_store %arg7[%c0_12, %c0_13, %c0_14], %16 {strides = array<i32>} : memref<1x32x256xf32, #tpu.memory_space<vmem>>, vector<1x32x256xf32>,
    return
  }
  func.func @transform_0(%arg0: i32, %arg1: i32) -> i32 {
    %c0_i32 = arith.constant 0 : i32
    %c0_i32_0 = arith.constant 0 : i32
    return %c0_i32 : i32
  }
  func.func @transform_1(%arg0: i32, %arg1: i32) -> (i32, i32, i32) {
    %c0_i32 = arith.constant 0 : i32
    %c0_i32_0 = arith.constant 0 : i32
    return %arg0, %c0_i32, %arg1 : i32, i32, i32
  }
  func.func @transform_2(%arg0: i32, %arg1: i32) -> (i32, i32, i32) {
    %c0_i32 = arith.constant 0 : i32
    %c0_i32_0 = arith.constant 0 : i32
    return %arg0, %c0_i32, %arg1 : i32, i32, i32
  }
  func.func @transform_3(%arg0: i32, %arg1: i32) -> (i32, i32) {
    %c0_i32 = arith.constant 0 : i32
    %c0_i32_0 = arith.constant 0 : i32
    %c0_i32_1 = arith.constant 0 : i32
    return %c0_i32, %c0_i32_0 : i32, i32
  }
  func.func @transform_4(%arg0: i32, %arg1: i32) -> (i32, i32) {
    %c0_i32 = arith.constant 0 : i32
    %c0_i32_0 = arith.constant 0 : i32
    %c0_i32_1 = arith.constant 0 : i32
    return %c0_i32, %c0_i32_0 : i32, i32
  }
  func.func @transform_5(%arg0: i32, %arg1: i32) -> (i32, i32, i32) {
    %c0_i32 = arith.constant 0 : i32
    %c0_i32_0 = arith.constant 0 : i32
    return %arg0, %c0_i32, %arg1 : i32, i32, i32
  }
}

</mosaic_0001>

<bundles_post_ra>
// kernel: tpu_custom_call.1
= control target key start
LH: loop header
LB: loop body
LE: loop exit
PB: predicated region body
PF: predicated region fallthrough
CT: control target
= control target key end

     0   :  { %s1372_s0 = inlined_call_operand.<no memory space> [shape: f32[1], index: 0, kind: input, shape index: {}]   ;;  %s1373_s1 = inlined_call_operand.hbm [shape: f32[2,32,256], index: 1, kind: input, shape index: {}]   ;;  %s1374_s2 = inlined_call_operand.hbm [shape: f32[2,32,256], index: 2, kind: input, shape index: {}]   ;;  %s1375_s3 = inlined_call_operand.hbm [shape: f32[32,32], index: 3, kind: input, shape index: {}]   ;;  %s1376_s4 = inlined_call_operand.hbm [shape: f32[32,32], index: 4, kind: input, shape index: {}]   ;;  %s1377_s5 = inlined_call_operand.hbm [shape: f32[2,32,256], index: 5, kind: output, shape index: {}]  }
   0x1   :  { %1380 = sst [smem:[#allocation19_spill]] %s1373_s1 }
   0x2   :  { %1381 = sst [smem:[#allocation20_spill]] %s1375_s3 }
   0x3   :  { %1382 = sst [smem:[#allocation21_spill]] %s1376_s4 }
   0x4   :  { %10 = sst [smem:[#allocation2]] %s1372_s0 }
   0x5   :  { %11 = vsyncpa [#allocation4], 0 }
   0x6   :  { %13 = vsyncpa [#allocation4 + $0x1], 0 }
   0x7   :  { %14 = vsyncpa [#allocation7], 0 }
   0x8   :  { %16 = vsyncpa [#allocation7 + $0x1], 0 }
   0x9   :  { %17 = vsyncpa [#allocation10], 0 }
   0xa   :  { %18 = vsyncpa [#allocation5], 0 }
   0xb   :  { %20 = vsyncpa [#allocation5 + $0x1], 0  ;;  %s1115_s20 = smov 0   ;;  %s1117_s21 = smov 0  }
   0xc   :  { %s1119_s22 = smov 0   ;;  %s1121_s23 = smov 0  }
   0xd   :  { %s1123_s24 = smov 0   ;;  %s1125_s25 = smov 0  }
   0xe LB: > { %s1146_s0 = sadd.s32 4294967295, %s1068_s25   ;;  %s740_s26 = sadd.s32 4294967294, %s1068_s25   ;;  %s1068_s25 = sphi %s1125_s25, %s26_s25   ;;  %s1064_s24 = sphi %s1123_s24, %s1407_s24   ;;  %s1060_s23 = sphi %s1121_s23, %s1406_s23   ;;  %s1056_s22 = sphi %s1119_s22, %s1405_s22   ;;  %s1052_s21 = sphi %s1117_s21, %s1404_s21   ;;  %s1048_s20 = sphi %s1115_s20, %s1403_s20  }
   0xf   : > { %p81_p0 = scmp.ne.s32.totalorder %s1052_s21, %s1048_s20  ;;  %p1378_p1 = scmp.eq.s32.totalorder %s1146_s0, 0 }
  0x10   : > { %p183_p3 = scmp.eq.s32.totalorder %s740_s26, 1  ;;  %p741_p5 = scmp.ge.s32.totalorder %s1068_s25, 1 }
  0x11   : > { %p1155_p4 = por %p1378_p1, %p81_p0  ;;  %p190_p7 = scmp.lt.s32.totalorder %s1068_s25, 3 }
  0x12   : > { %p1160_p6 = por %p183_p3, %p81_p0  ;;  %s1070_s30 = smov [#allocation8]  }
  0x13   : > { %p1165_p8 = pnand %p741_p5, %p190_p7  ;;  %s205_s6 = sshll.u32 %s1070_s30, 4  ;;  %s206_s6 = int_to_ptr.vmem [resolvable:$true] %s205_s6 }
  0x14   : > { %s1384_s28 = scalar_select %p1160_p6, 1, 0 }
  0x15   : > { %p787_p9 = pneg %p1165_p8  ;;  %s1071_s8 = smov [#allocation9]  }
  0x16   : > { %s218_s9 = sshll.u32 %s1071_s8, 4  ;;  %s879_s10 = scalar_lea.vmem %s206_s6, 512  ;;  %s219_s9 = int_to_ptr.vmem [resolvable:$true] %s218_s9 }
  0x17   : > { %p1174_p11 = pnand %p787_p9, %p1378_p1  ;;  %p880_p13 = scmp.ne.s32.totalorder %s206_s6, %s879_s10 }
  0x18   : > { %p887_p5 = scmp.lt.s32.totalorder %s206_s6, %s206_s6  ;;  %p888_p7 = scmp.lt.s32.totalorder %s879_s10, %s879_s10 }
  0x19   : > { %p870_p12 = pneg %p1174_p11 }
  0x1a   : > { %p889_p10 = por %p888_p7, %p887_p5 }
  0x1b   : > { %p882_p0 = pnand %p880_p13, %p870_p12 }
  0x1d   : > { %p883_p3 = pneg %p882_p0 }
  0x1f   : > { %p890_p9 = pnand %p889_p10, %p883_p3 }
  0x21   : > { %893 = shalt.err (!%p890_p9)
}
  0x22   : > { %s1072_s11 = smov 128   ;;  %s1073_s12 = smov 8  }
  0x23   : > { %s1387_s3 = sld [smem:[#allocation20_spill]]  ;;  %s905_s15 = scalar_lea.vmem %s219_s9, 512 }
  0x24   : > { %p906_p1 = scmp.ne.s32.totalorder %s219_s9, %s905_s15  ;;  %p913_p2 = scmp.lt.s32.totalorder %s219_s9, %s219_s9 }
  0x25   : > { %p914_p6 = scmp.lt.s32.totalorder %s905_s15, %s905_s15 }
  0x26   : > { %p908_p13 = pnand %p906_p1, %p870_p12 }
  0x27   : > { %p915_p5 = por %p914_p6, %p913_p2 }
  0x28   : > { %p909_p0 = pneg %p908_p13 }
  0x29   : > { %790 = dma.hbm_to_vmem [thread:$0]  (!%p1174_p11), %s1387_s3, 512, %s206_s6, [#allocation7], %s1072_s11, %s1072_s11, %s1073_s12  }
  0x2a   : > { %p916_p10 = pnand %p915_p5, %p909_p0 }
  0x2c   : > { %919 = shalt.err (!%p916_p10)
}
  0x2d   : > { %s1388_s4 = sld [smem:[#allocation21_spill]]  ;;  %s38_s18 = sadd.s32 1, %s1064_s24 }
  0x2e   : > { %s68_s19 = sadd.s32 1, %s1056_s22  ;;  %p40_p1 = scmp.ge.s32.totalorder %s38_s18, 2 }
  0x2f   : > { %p75_p2 = scmp.ne.s32.totalorder %s1056_s22, %s1052_s21  ;;  %p76_p6 = scmp.eq.s32.totalorder %s1068_s25, 0 }
  0x30   : > { %p807_p12 = scmp.lt.s32.totalorder %s1068_s25, 2  ;;  %s1409_s18 = smov (%p40_p1, %s38_s18), 0 }
  0x31   : > { %1389 = sst [smem:[#allocation17_spill]] %s1409_s18  ;;  %p77_p3 = por %p76_p6, %p75_p2 }
  0x32   : > { %p1390_p7 = scmp.eq.s32.totalorder %s1146_s0, 1  ;;  %s63_s30 = ssub.s32 %s1064_s24, %s1409_s18 }
  0x33   : > { %793 = dma.hbm_to_vmem [thread:$0]  (!%p1174_p11), %s1388_s4, 512, %s219_s9, [#allocation10], %s1072_s11, %s1072_s11, %s1073_s12  }
  0x34   : > { %p1206_p9 = por %p1390_p7, %p75_p2  ;;  %s232_s6 = sand.u32 1, %s1056_s22  }
  0x35   : > { %p66_p11 = scmp.eq.s32.totalorder %s63_s30, 0  ;;  %s1213_s7 = sshll.u32 %s232_s6, 6 }
  0x36   : > { %s770_s8 = sshll.u32 %s1064_s24, 10  ;;  %s1393_s1 = sld [smem:[#allocation19_spill]] }
  0x37   : > { %s1217_s9 = scalar_select %p66_p11, %s1056_s22, %s68_s19  }
  0x38   : > { %s236_s13 = scalar_lea.vmem [#allocation3], %s1213_s7  ;;  %p1227_p13 = pnand %p807_p12, %p77_p3 }
  0x39   : > { %1392 = sst [smem:[#allocation18_spill]] %s1217_s9  ;;  %s245_s14 = sshll.u32 %s236_s13, 4  ;;  %s246_s14 = int_to_ptr.vmem [resolvable:$true] %s245_s14 }
  0x3a   : > { %s233_s16 = scalar_lea.sflag [#allocation4], %s232_s6  ;;  %p922_p0 = pneg %p1227_p13 }
  0x3b   : > { %s933_s17 = scalar_lea.vmem %s246_s14, 1024  ;;  %s1074_s19 = smov [#allocation3]  }
  0x3c   : > { %s244_s12 = scalar_lea.hbm %s1393_s1, %s770_s8  ;;  %p934_p5 = scmp.ne.s32.totalorder %s246_s14, %s933_s17 }
  0x3d   : > { %s938_s30 = sshll.u32 %s1074_s19, 4  ;;  %s939_s30 = int_to_ptr.vmem [resolvable:$false] %s938_s30 }
  0x3e   : > { %p936_p10 = pnand %p934_p5, %p922_p0  ;;  %s940_s10 = scalar_lea.vmem %s939_s30, 2048 }
  0x3f   : > { %p941_p2 = scmp.lt.s32.totalorder %s246_s14, %s939_s30  ;;  %p942_p6 = scmp.lt.s32.totalorder %s940_s10, %s933_s17 }
  0x40   : > { %p937_p1 = pneg %p936_p10 }
  0x41   : > { %p943_p12 = por %p942_p6, %p941_p2 }
  0x43   : > { %p944_p3 = pnand %p943_p12, %p937_p1 }
  0x45   : > { %947 = shalt.err (!%p944_p3)
}
  0x46   : > { %s1075_s11 = smov 256   ;;  %s1076_s6 = smov 16  }
  0x47   : > { %797 = dma.hbm_to_vmem [thread:$0]  (!%p1227_p13), %s244_s12, 1024, %s246_s14, %s233_s16, %s1075_s11, %s1075_s11, %s1076_s6  }
  0x48   : > { %s267_s19 = scalar_lea.hbm %s1374_s2, %s770_s8  ;;  %s259_s3 = scalar_lea.vmem [#allocation6], %s1213_s7 }
  0x49   : > { %s268_s30 = sshll.u32 %s259_s3, 4  ;;  %s255_s17 = sand.u32 1, %s1068_s25   ;;  %s269_s30 = int_to_ptr.vmem [resolvable:$true] %s268_s30 }
  0x4a   : > { %s256_s10 = scalar_lea.sflag [#allocation7], %s255_s17  ;;  %s961_s4 = scalar_lea.vmem %s269_s30, 1024 }
  0x4b   : > { %p962_p7 = scmp.ne.s32.totalorder %s269_s30, %s961_s4  ;;  %s1077_s18 = smov [#allocation6]  }
  0x4c   : > { %s966_s9 = sshll.u32 %s1077_s18, 4  ;;  %s967_s9 = int_to_ptr.vmem [resolvable:$false] %s966_s9 }
  0x4d   : > { %p964_p11 = pnand %p962_p7, %p922_p0  ;;  %s968_s12 = scalar_lea.vmem %s967_s9, 2048 }
  0x4e   : > { %p969_p10 = scmp.lt.s32.totalorder %s269_s30, %s967_s9  ;;  %p970_p1 = scmp.lt.s32.totalorder %s968_s12, %s961_s4 }
  0x4f   : > { %p965_p5 = pneg %p964_p11 }
  0x50   : > { %p971_p2 = por %p970_p1, %p969_p10 }
  0x52   : > { %p972_p6 = pnand %p971_p2, %p965_p5 }
  0x54   : > { %975 = shalt.err (!%p972_p6)
}
  0x55   : > { %800 = dma.hbm_to_vmem [thread:$0]  (!%p1227_p13), %s267_s19, 1024, %s269_s30, %s256_s10, %s1075_s11, %s1075_s11, %s1076_s6  }
  0x56   : > { %280 = sbr.rel (%p1165_p8) target bundleno = 338 (0x152), region = 40  ;;  %s1253_s1 = sand.u32 (!%p1165_p8), 1, %s1052_s21  }
  0x57   : > { %s1256_s3 = sshll.u32 (!%p1165_p8), %s1253_s1, 6  ;;  %s283_s18 = scalar_lea.sflag (!%p1165_p8), [#allocation4], %s1253_s1 }
  0x58   : > { %s1260_s4 = scalar_lea.vmem (!%p1165_p8), [#allocation3], %s1256_s3 }
  0x5b   : > { %1027 = dma.done.wait (%p1155_p4), %s283_s18, 1024  }
  0x5c   : > { %1029 = vsyncadd (%p1155_p4), %s283_s18, 4294966272  ;;  %s291_s29 = sand.u32 1, %s1146_s0   ;;  %s1268_s8 = scalar_lea.vmem [#allocation6], %s1256_s3 }
  0x5d   : > { %s292_s7 = scalar_lea.sflag [#allocation7], %s291_s29 }
  0x5e   : > { %1031 = dma.done.wait (%p1155_p4), %s292_s7, 1024  }
  0x5f   : > { %1033 = vsyncadd (%p1155_p4), %s292_s7, 4294966272  ;;  %p1395_p8 = scmp.eq.s32.totalorder %s1146_s0, 0 }
  0x61   : > { %1035 = dma.done.wait (%p1395_p8), [#allocation7], 512   ;;  %p1396_p13 = pmov %p1395_p8 }
  0x62   : > { %p1397_p0 = pmov %p1395_p8 }
  0x63   : > { %1037 = vsyncadd (%p1396_p13), [#allocation7], 4294966784 }
  0x64   : > { %1039 = dma.done.wait (%p1397_p0), [#allocation10], 512   ;;  %p1398_p12 = pmov %p1397_p0 }
  0x65   : > { %v1078_v0 = vmov 0.0   ;;  %v361_v1 = vld [vmem:[%s1268_s8 + $0x38] sm:$0xff]  ;;  %v360_v3 = vld [vmem:[%s1268_s8 + $0x30] sm:$0xff]  ;;  %v359_v5 = vld [vmem:[%s1268_s8 + $0x28] sm:$0xff]  ;;  %vm362_vm0 = vcmask 261120   ;;  %s573_s0 = sld [smem:[#allocation2]] }
  0x66   : > { %1041 = vsyncadd (%p1398_p12), [#allocation10], 4294966784  ;;  %439 = vmatprep.mubr.f32.mxu0 %v1078_v0  ;;  %540 = vmatprep.mubr.f32.mxu1 %v1078_v0  ;;  %v349_v2 = vld [vmem:[%s1260_s4 + $0x38] sm:$0xff]  ;;  %v348_v4 = vld [vmem:[%s1260_s4 + $0x30] sm:$0xff]  ;;  %s1307_s27 = scalar_lea.vmem [#allocation11], %s1256_s3  ;;  %s772_s14 = sshll.u32 %s1060_s23, 10 }
  0x67   : > { %399 = vmatprep.subr.mxu0 %v361_v1  ;;  %500 = vmatprep.subr.mxu1 %v349_v2  ;;  %v347_v6 = vld [vmem:[%s1260_s4 + $0x28] sm:$0xff]  ;;  %v358_v7 = vld [vmem:[%s1268_s8 + $0x20] sm:$0xff]  ;;  %v357_v9 = vld [vmem:[%s1268_s8 + $0x18] sm:$0xff]  ;;  %s607_s9 = sshll.u32 %s1307_s27, 4  ;;  %s1322_s11 = scalar_lea.hbm %s1377_s5, %s772_s14  ;;  %s1316_s9 = int_to_ptr.vmem [resolvable:$true] %s607_s9 }
  0x68   : > { %400 = vmatpush1.msra.mxu0 %v360_v3  ;;  %501 = vmatpush1.msra.mxu1 %v348_v4  ;;  %v346_v8 = vld [vmem:[%s1260_s4 + $0x20] sm:$0xff]  ;;  %v345_v10 = vld [vmem:[%s1260_s4 + $0x18] sm:$0xff]  ;;  %v356_v11 = vld [vmem:[%s1268_s8 + $0x10] sm:$0xff]  ;;  %s592_s6 = scalar_lea.sflag [#allocation5], %s1253_s1  ;;  %s976_s13 = scalar_lea.vmem %s1316_s9, 1024 }
  0x69   : > { %401 = vmatprep.subr.mxu0 %v359_v5  ;;  %502 = vmatprep.subr.mxu1 %v347_v6  ;;  %v344_v12 = vld [vmem:[%s1260_s4 + $0x10] sm:$0xff]  ;;  %v355_v13 = vld [vmem:[%s1268_s8 + $0x8] sm:$0xff]  ;;  %v354_v15 = vld [vmem:[%s1268_s8] sm:$0xff]  ;;  %p977_p4 = scmp.ne.s32.totalorder %s1316_s9, %s976_s13  ;;  %s1079_s23 = smov [#allocation11]  }
  0x6a   : > { %402 = vmatpush1.msra.mxu0 %v358_v7  ;;  %503 = vmatpush1.msra.mxu1 %v346_v8  ;;  %v343_v14 = vld [vmem:[%s1260_s4 + $0x8] sm:$0xff]  ;;  %v342_v16 = vld [vmem:[%s1260_s4] sm:$0xff]  ;;  %v352_v21 = vld [vmem:[#allocation9 + $0x10] sm:$0xff]  ;;  %s980_s19 = sshll.u32 %s1079_s23, 4  ;;  %s981_s19 = int_to_ptr.vmem [resolvable:$false] %s980_s19 }
  0x6b   : > { %403 = vmatprep.subr.mxu0 %v357_v9  ;;  %504 = vmatprep.subr.mxu1 %v345_v10  ;;  %v350_v17 = vld [vmem:[#allocation9] sm:$0xff]  ;;  %v351_v19 = vld [vmem:[#allocation9 + $0x8] sm:$0xff]  ;;  %v340_v22 = vld [vmem:[#allocation8 + $0x10] sm:$0xff]  ;;  %v574_v28 = vstv %s573_s0  ;;  %p978_p3 = pnand %p977_p4, %p1206_p9  ;;  %s982_s30 = scalar_lea.vmem %s981_s19, 2048 }
  0x6c   : > { %404 = vmatpush1.msra.mxu0 %v356_v11  ;;  %505 = vmatpush1.msra.mxu1 %v344_v12  ;;  %v338_v18 = vld [vmem:[#allocation8] sm:$0xff]  ;;  %v339_v20 = vld [vmem:[#allocation8 + $0x8] sm:$0xff]  ;;  %v353_v23 = vld [vmem:[#allocation9 + $0x18] sm:$0xff]  ;;  %p983_p11 = scmp.lt.s32.totalorder %s1316_s9, %s981_s19  ;;  %p984_p5 = scmp.lt.s32.totalorder %s982_s30, %s976_s13 }
  0x6d   : > { %405 = vmatprep.subr.mxu0 %v355_v13  ;;  %506 = vmatprep.subr.mxu1 %v343_v14  ;;  %v341_v24 = vld [vmem:[#allocation8 + $0x18] sm:$0xff]  ;;  %p979_p7 = pneg %p978_p3 }
  0x6e   : > { %406 = vmatpush1.msra.mxu0 %v354_v15  ;;  %507 = vmatpush1.msra.mxu1 %v342_v16  ;;  %p985_p10 = por %p984_p5, %p983_p11 }
  0x6f   : > { %757 = vmatmul.mubr.msk.f32.vlgmr.msra.gmra.mxu0 %vm362_vm0, %v350_v17  ;;  %761 = vmatmul.mubr.msk.f32.vlgmr.msra.gmra.mxu1 %vm362_vm0, %v338_v18 }
  0x70   : > { %445 = vmatprep.mubr.f32.mxu0 %v1078_v0  ;;  %546 = vmatprep.mubr.f32.mxu1 %v1078_v0  ;;  %p986_p1 = pnand %p985_p10, %p979_p7 }
  0x73   : > { %758 = vmatmul.mubr.msk.f32.gmra.mxu0 %vm362_vm0, %v351_v19  ;;  %762 = vmatmul.mubr.msk.f32.gmra.mxu1 %vm362_vm0, %v339_v20 }
  0x74   : > { %451 = vmatprep.mubr.f32.mxu0 %v1078_v0  ;;  %552 = vmatprep.mubr.f32.mxu1 %v1078_v0 }
  0x77   : > { %759 = vmatmul.mubr.msk.f32.gmra.mxu0 %vm362_vm0, %v352_v21  ;;  %763 = vmatmul.mubr.msk.f32.gmra.mxu1 %vm362_vm0, %v340_v22 }
  0x78   : > { %457 = vmatprep.mubr.f32.mxu0 %v1078_v0  ;;  %558 = vmatprep.mubr.f32.mxu1 %v1078_v0 }
  0x7b   : > { %760 = vmatmul.mubr.msk.f32.gmra.mxu0 %vm362_vm0, %v353_v23  ;;  %764 = vmatmul.mubr.msk.f32.gmra.mxu1 %vm362_vm0, %v341_v24 }
 0x12f   : > { %v441_v25 = vpop.f32.mrf.mxu0  ;;  %v542_v26 = vpop.f32.mrf.mxu1 }
 0x130   : > { %v543_v27 = vadd.f32 %v542_v26, %v441_v25 }
 0x131   : > { %v443_v29 = vpop.f32.mrf.mxu0  ;;  %v544_v30 = vpop.f32.mrf.mxu1 }
 0x132   : > { %v565_v31 = vmax.f32 %v543_v27, 0.0  ;;  %v545_v32 = vadd.f32 %v544_v30, %v443_v29 }
 0x133   : > { %v447_v33 = vpop.f32.mrf.mxu0  ;;  %v548_v34 = vpop.f32.mrf.mxu1 }
 0x134   : > { %v575_v35 = vmul.f32 %v574_v28, %v565_v31  ;;  %v566_v36 = vmax.f32 %v545_v32, 0.0  ;;  %v549_v37 = vadd.f32 %v548_v34, %v447_v33 }
 0x135   : > { %v449_v38 = vpop.f32.mrf.mxu0  ;;  %v550_v39 = vpop.f32.mrf.mxu1 }
 0x136   : > { %583 = vst [vmem:[%s1307_s27] sm:$0xff] %v575_v35  ;;  %v576_v40 = vmul.f32 %v574_v28, %v566_v36  ;;  %v567_v41 = vmax.f32 %v549_v37, 0.0  ;;  %v551_v42 = vadd.f32 %v550_v39, %v449_v38 }
 0x137   : > { %v453_v43 = vpop.f32.mrf.mxu0  ;;  %v554_v44 = vpop.f32.mrf.mxu1 }
 0x138   : > { %584 = vst [vmem:[%s1307_s27 + $0x8] sm:$0xff] %v576_v40  ;;  %v577_v45 = vmul.f32 %v574_v28, %v567_v41  ;;  %v568_v46 = vmax.f32 %v551_v42, 0.0  ;;  %v555_v47 = vadd.f32 %v554_v44, %v453_v43 }
 0x139   : > { %v455_v48 = vpop.f32.mrf.mxu0  ;;  %v556_v49 = vpop.f32.mrf.mxu1 }
 0x13a   : > { %585 = vst [vmem:[%s1307_s27 + $0x10] sm:$0xff] %v577_v45  ;;  %v578_v50 = vmul.f32 %v574_v28, %v568_v46  ;;  %v569_v51 = vmax.f32 %v555_v47, 0.0  ;;  %v557_v52 = vadd.f32 %v556_v49, %v455_v48 }
 0x13b   : > { %v459_v53 = vpop.f32.mrf.mxu0  ;;  %v560_v54 = vpop.f32.mrf.mxu1 }
 0x13c   : > { %586 = vst [vmem:[%s1307_s27 + $0x18] sm:$0xff] %v578_v50  ;;  %v579_v55 = vmul.f32 %v574_v28, %v569_v51  ;;  %v570_v56 = vmax.f32 %v557_v52, 0.0  ;;  %v561_v57 = vadd.f32 %v560_v54, %v459_v53 }
 0x13d   : > { %v461_v58 = vpop.f32.mrf.mxu0  ;;  %v562_v59 = vpop.f32.mrf.mxu1 }
 0x13e   : > { %587 = vst [vmem:[%s1307_s27 + $0x20] sm:$0xff] %v579_v55  ;;  %v580_v60 = vmul.f32 %v574_v28, %v570_v56  ;;  %v571_v61 = vmax.f32 %v561_v57, 0.0  ;;  %v563_v62 = vadd.f32 %v562_v59, %v461_v58 }
 0x140   : > { %588 = vst [vmem:[%s1307_s27 + $0x28] sm:$0xff] %v580_v60  ;;  %v581_v63 = vmul.f32 %v574_v28, %v571_v61  ;;  %v572_v0 = vmax.f32 %v563_v62, 0.0 }
 0x142   : > { %589 = vst [vmem:[%s1307_s27 + $0x30] sm:$0xff] %v581_v63  ;;  %v582_v1 = vmul.f32 %v574_v28, %v572_v0 }
 0x144   : > { %590 = vst [vmem:[%s1307_s27 + $0x38] sm:$0xff] %v582_v1 }
 0x145   : > { %989 = shalt.err (!%p986_p1)
}
 0x146   : > { %s990_s17 = scalar_lea.hbm %s1322_s11, 1024  ;;  %s994_s3 = scalar_lea.hbm %s1377_s5, 2048 }
 0x147   : > { %p991_p2 = scmp.ne.s32.totalorder %s1322_s11, %s990_s17  ;;  %p995_p13 = scmp.lt.s32.totalorder %s1322_s11, %s1377_s5 }
 0x148   : > { %p996_p0 = scmp.lt.s32.totalorder %s994_s3, %s990_s17 }
 0x149   : > { %p992_p6 = pnand %p991_p2, %p1206_p9 }
 0x14a   : > { %p997_p12 = por %p996_p0, %p995_p13 }
 0x14b   : > { %p993_p8 = pneg %p992_p6 }
 0x14d   : > { %p998_p4 = pnand %p997_p12, %p993_p8 }
 0x14f   : > { %1001 = shalt.err (!%p998_p4)
}
 0x150   : > { %s1080_s29 = smov 256   ;;  %s1081_s7 = smov 16  }
 0x151   : > { %785 = dma.vmem_to_hbm [thread:$0]  (%p1206_p9), %s1316_s9, 1024, %s1322_s11, %s592_s6, %s1080_s29, %s1080_s29, %s1081_s7  }
 0x152 PF: > { %s622_s8 = sand.u32 1, %s1048_s20   ;;  %p1399_p3 = scmp.ne.s32.totalorder %s1384_s28, 0 }
 0x153   : > { %p1400_p7 = scmp.ge.s32.totalorder %s1068_s25, 2  ;;  %s623_s0 = scalar_lea.sflag [#allocation5], %s622_s8 }
 0x155   : > { %p802_p11 = pnand %p1400_p7, %p1399_p3 }
 0x157   : > { %p803_p5 = pneg %p802_p11 }
 0x159   : > { %1043 = dma.done.wait (%p803_p5), %s623_s0, 1024  }
 0x15a   : > { %1045 = vsyncadd (%p803_p5), %s623_s0, 4294966272  ;;  %s26_s25 = sadd.s32 1, %s1068_s25   ;;  %s1401_s26 = sld [smem:[#allocation18_spill]] }
 0x15b   : > { %p23_p10 = scmp.ge.s32.totalorder %s26_s25, 4   ;;  %s1402_s1 = sld [smem:[#allocation17_spill]] }
 0x15c   : > { %s1403_s20 = smov %s1052_s21  ;;  %s1404_s21 = smov %s1056_s22 }
 0x15d   : > { %s1406_s23 = smov %s1064_s24  ;;  %25 = sbr.rel (!%p23_p10) target bundleno = 14 (0xe), region = 106 }
 0x160   : > { %s1405_s22 = smov %s1401_s26 }
 0x161   : > { %s1407_s24 = smov %s1402_s1 }
 0x162   :  { %628 = vsyncpa [#allocation4], 1 }
 0x163   :  { %630 = vsyncpa [#allocation4 + $0x1], 1 }
 0x164   :  { %631 = vsyncpa [#allocation7], 1 }
 0x165   :  { %633 = vsyncpa [#allocation7 + $0x1], 1 }
 0x166   :  { %634 = vsyncpa [#allocation10], 1 }
 0x167   :  { %635 = vsyncpa [#allocation5], 1 }
 0x168   :  { %637 = vsyncpa [#allocation5 + $0x1], 1 }

</bundles_post_ra>
